<compile_context>
chip_gen: v6e
topology: v6e:2x2x1
jax: 0.10.0
libtpu: 0.0.40
codegen_flags: <defaults>
</compile_context>

<pallas_src>
import functools
import numpy as np
import jax
import jax.numpy as jnp
from jax import lax
from jax.experimental import pallas as pl
from jax.experimental.pallas import tpu as pltpu


# ---- Lanczos lgamma (g=7, n=9), valid for z >= 1 (here z = Y+1 >= 1) -------
_LANCZOS_G = 7.0
_LANCZOS_P = (
    676.5203681218851, -1259.1392167224028, 771.32342877765313,
    -176.61502916214059, 12.507343278686905, -0.13857109526572012,
    9.9843695780195716e-6, 1.5056327351493116e-7)
_LOG_SQRT_2PI = 0.9189385332046727  # 0.5 * log(2*pi)

# Pairwise-combine p_a/(z+a) + p_b/(z+b) -> (n1*z + n0) / (z^2 + s*z + q)
# so the unrolled series needs 4 divides instead of 8 (EUP pressure halved).
def _make_lanczos_pairs():
    pairs = []
    for k in range(4):
        pa, pb = _LANCZOS_P[2 * k], _LANCZOS_P[2 * k + 1]
        a, b = float(2 * k + 1), float(2 * k + 2)
        pairs.append((pa + pb,            # n1
                      b * pa + a * pb,    # n0
                      a + b,              # s
                      a * b))             # q
    return tuple(pairs)


_LANCZOS_PAIRS = _make_lanczos_pairs()


def _lgamma(z):
    """log Gamma(z) for z >= 1. Only mul/add/div + 2 logs -> VPU/EUP friendly."""
    zm1 = z - 1.0
    zsq = zm1 * zm1
    x = jnp.full_like(zm1, 0.99999999999980993)
    for n1, n0, s, q in _LANCZOS_PAIRS:          # unrolled: 4 rational terms
        x = x + (n1 * zm1 + n0) / (zsq + s * zm1 + q)
    t = zm1 + (_LANCZOS_G + 0.5)
    return _LOG_SQRT_2PI + (zm1 + 0.5) * jnp.log(t) - t + jnp.log(x)


def _glmq_poi_kernel(n_voxel,
                     xt_ref, yrow_ref, ymat_ref, zt_ref, ytrow_ref,
                     bw_ref, gw_ref,
                     out_ref, acc_ref):
    """One voxel tile per grid step. acc_ref (SMEM f32[8]) layout:
       [0] sum(y*log_mu_X)  [1] sum(mu_X)  [2] l_Y
       [3] sum(y_t*log_mu_Z) [4] sum(mu_Z)
    """
    i = pl.program_id(0)
    tile = ymat_ref.shape[-1]

    @pl.when(i == 0)
    def _init():
        # Tiny study-side (Z / y_t / gamma) work, done once.
        log_mu_z = jnp.sum(zt_ref[...] * gw_ref[...], axis=0, keepdims=True)  # (1,Ns)
        mu_z = jnp.exp(log_mu_z)
        acc_ref[0] = 0.0
        acc_ref[1] = 0.0
        acc_ref[2] = 0.0
        acc_ref[3] = jnp.sum(ytrow_ref[...] * log_mu_z)
        acc_ref[4] = jnp.sum(mu_z)

    # Mask for the (possibly padded) last tile: valid global voxel columns.
    col = i * tile + lax.broadcasted_iota(jnp.int32, (1, tile), 1)
    valid = col < n_voxel                                            # (1, tile)

    # Voxel-side matvec, lane-dense: log_mu_X as a (1, tile) row.
    log_mu_x = jnp.sum(xt_ref[...] * bw_ref[...], axis=0, keepdims=True)
    mu_x = jnp.exp(log_mu_x)
    acc_ref[0] += jnp.sum(jnp.where(valid, yrow_ref[...] * log_mu_x, 0.0))
    acc_ref[1] += jnp.sum(jnp.where(valid, mu_x, 0.0))

    # l_Y partial: select-before-log; whole term is exactly 0 where Y == 0,
    # which matches torch.nansum (0*log(0) -> NaN -> dropped; -Y+lgamma(1)=0).
    Y = ymat_ref[...]                                                # (Ns, tile)
    pos = Y > 0.0
    term = Y * jnp.log(jnp.where(pos, Y, 1.0)) - Y + _lgamma(Y + 1.0)
    acc_ref[2] += jnp.sum(jnp.where(pos & valid, term, 0.0))

    @pl.when(i == pl.num_programs(0) - 1)
    def _finalize():
        l_poi = acc_ref[0] + acc_ref[3] - acc_ref[1] * acc_ref[4]
        out_ref[0, 0] = l_poi
        out_ref[0, 1] = acc_ref[2]


def _round_up(a, b):
    return ((a + b - 1) // b) * b


def glmq_poi_forward(x_param, X, y, Y, Z, y_t, beta_w, gamma_w, *,
                     tile_voxels=2048):
    """Returns -l, matching GLMQPOI.forward."""
    f32 = jnp.float32
    n_voxel, beta_dim = X.shape
    n_study, gamma_dim = Z.shape
    M = Y.shape[0]

    # Lane-dense layout plumbing (pure reshapes/transposes, done once in XLA).
    Xt = X.astype(f32).T                         # (beta_dim, n_voxel)
    yrow = y.astype(f32).reshape(1, n_voxel)     # (1, n_voxel)
    Ymat = Y.astype(f32)                         # (n_study, n_voxel)
    Zt = Z.astype(f32).T                         # (gamma_dim, n_study)
    ytrow = y_t.astype(f32).reshape(1, n_study)  # (1, n_study)
    bwt = beta_w.astype(f32).reshape(beta_dim, 1)
    gwt = gamma_w.astype(f32).reshape(gamma_dim, 1)

    # Lane tile: multiple of 128, no larger than the (128-rounded) problem.
    tile = max(128, (int(tile_voxels) // 128) * 128)
    tile = min(tile, _round_up(n_voxel, 128))
    grid = (pl.cdiv(n_voxel, tile),)

    kernel = functools.partial(_glmq_poi_kernel, int(n_voxel))

    in_specs = [
        pl.BlockSpec((beta_dim, tile), lambda i: (0, i)),       # X^T tile
        pl.BlockSpec((1, tile), lambda i: (0, i)),              # y row tile
        pl.BlockSpec((n_study, tile), lambda i: (0, i)),        # Y tile
        pl.BlockSpec((gamma_dim, n_study), lambda i: (0, 0)),   # Z^T (resident)
        pl.BlockSpec((1, n_study), lambda i: (0, 0)),           # y_t row (resident)
        pl.BlockSpec((beta_dim, 1), lambda i: (0, 0)),          # beta_w column
        pl.BlockSpec((gamma_dim, 1), lambda i: (0, 0)),         # gamma_w column
    ]

    partial_sums = pl.pallas_call(
        kernel,
        out_shape=jax.ShapeDtypeStruct((1, 2), jnp.float32),
        grid_spec=pltpu.PrefetchScalarGridSpec(
            num_scalar_prefetch=0,
            grid=grid,
            in_specs=in_specs,
            out_specs=pl.BlockSpec(memory_space=pltpu.MemorySpace.SMEM),
            scratch_shapes=[pltpu.SMEM((8,), jnp.float32)],
        ),
        compiler_params=pltpu.CompilerParams(
            dimension_semantics=("arbitrary",)),   # accumulation over voxel tiles
    )(Xt, yrow, Ymat, Zt, ytrow, bwt, gwt)

    l_poi = partial_sums[0, 0]
    l_Y = partial_sums[0, 1]

    # Scalar epilogue hoisted out of the kernel (perf review item 3).
    theta = jax.nn.sigmoid(jnp.asarray(x_param, jnp.float32))
    l = 0.5 * float(M) * jnp.log(theta) + theta * l_poi + (1.0 - theta) * l_Y
    return -l


def _reference(x_param, X, y, Y, Z, y_t, beta_w, gamma_w):
    theta = jax.nn.sigmoid(x_param)
    M = Y.shape[0]
    log_mu_X = X @ beta_w.T
    mu_X = jnp.exp(log_mu_X)
    log_mu_Z = Z @ gamma_w.T
    mu_Z = jnp.exp(log_mu_Z)
    l_poi = (jnp.sum(y * log_mu_X) + jnp.sum(y_t * log_mu_Z)
             - jnp.sum(mu_X) * jnp.sum(mu_Z))
    l_Y = jnp.nansum(Y * jnp.log(Y) - Y + jax.scipy.special.gammaln(Y + 1.0))
    l = 0.5 * M * jnp.log(theta) + theta * l_poi + (1.0 - theta) * l_Y
    return -l


if __name__ == "__main__":
    key = jax.random.PRNGKey(0)
    k1, k2, k3, k4, k5, k6, k7 = jax.random.split(key, 7)

    n_voxel, n_study = 256, 8
    beta_dim, gamma_dim = 32, 16

    X = jax.random.normal(k1, (n_voxel, beta_dim), dtype=jnp.float32)
    Z = jax.random.normal(k2, (n_study, gamma_dim), dtype=jnp.float32)
    y = jax.random.randint(k3, (n_voxel, 1), 0, 5).astype(jnp.float32)
    y_t = jax.random.randint(k4, (n_study, 1), 0, 10).astype(jnp.float32)
    Y = jax.random.randint(k5, (n_study, n_voxel), 0, 6).astype(jnp.float32)

    # Parameters: uniform_(-0.01, 0.01) for both linears, x initialized to 0.
    beta_w = jax.random.uniform(k6, (1, beta_dim), jnp.float32, -0.01, 0.01)
    gamma_w = jax.random.uniform(k7, (1, gamma_dim), jnp.float32, -0.01, 0.01)
    x_param = jnp.array(0.0, dtype=jnp.float32)

    # tile_voxels=128 -> grid of 2 steps, exercising the accumulation path.
    out = glmq_poi_forward(x_param, X, y, Y, Z, y_t, beta_w, gamma_w,
                           tile_voxels=128)
    out = jax.block_until_ready(out)

    ref = _reference(x_param, X, y, Y, Z, y_t, beta_w, gamma_w)
    np.testing.assert_allclose(np.asarray(out), np.asarray(ref),
                               rtol=1e-3, atol=1e-3)
    print("KERNEL_OK")
</pallas_src>

<mosaic_0001>
module attributes {stable_mosaic.version = 11 : i64} {
  func.func @_glmq_poi_kernel(%arg0: i32, %arg1: memref<32x128xf32, #tpu.memory_space<vmem>>, %arg2: memref<1x128xf32, #tpu.memory_space<vmem>>, %arg3: memref<8x128xf32, #tpu.memory_space<vmem>>, %arg4: memref<16x8xf32, #tpu.memory_space<vmem>>, %arg5: memref<1x8xf32, #tpu.memory_space<vmem>>, %arg6: memref<32x1xf32, #tpu.memory_space<vmem>>, %arg7: memref<16x1xf32, #tpu.memory_space<vmem>>, %arg8: memref<1x2xf32, #tpu.memory_space<smem>>, %arg9: memref<8xf32, #tpu.memory_space<smem>>) attributes {dimension_semantics = [#tpu.dimension_semantics<arbitrary>], iteration_bounds = array<i64: 2>, scalar_prefetch = 0 : i64, scratch_operands = 1 : i64, tpu.core_type = #tpu.core_type<tc>, window_params = [{transform_indices = @transform_0, window_bounds = array<i64: 32, 128>}, {transform_indices = @transform_1, window_bounds = array<i64: 1, 128>}, {transform_indices = @transform_2, window_bounds = array<i64: 8, 128>}, {pipeline_mode = #tpu.pipeline_mode<synchronous>, transform_indices = @transform_3, window_bounds = array<i64: 16, 8>}, {pipeline_mode = #tpu.pipeline_mode<synchronous>, transform_indices = @transform_4, window_bounds = array<i64: 1, 8>}, {pipeline_mode = #tpu.pipeline_mode<synchronous>, transform_indices = @transform_5, window_bounds = array<i64: 32, 1>}, {pipeline_mode = #tpu.pipeline_mode<synchronous>, transform_indices = @transform_6, window_bounds = array<i64: 16, 1>}, {transform_indices = @transform_7, window_bounds = array<i64: 1, 2>}]} {
    %c0_i32 = arith.constant 0 : i32
    %0 = arith.cmpi eq, %arg0, %c0_i32 : i32
    %1 = arith.extui %0 : i1 to i32
    %c0_i32_0 = arith.constant 0 : i32
    %2 = arith.cmpi ne, %1, %c0_i32_0 : i32
    scf.if %2 {
      %c0_43 = arith.constant 0 : index
      %c0_44 = arith.constant 0 : index
      %120 = vector.load %arg4[%c0_43, %c0_44] : memref<16x8xf32, #tpu.memory_space<vmem>>, vector<16x8xf32>
      %c0_45 = arith.constant 0 : index
      %c0_46 = arith.constant 0 : index
      %121 = vector.load %arg7[%c0_45, %c0_46] : memref<16x1xf32, #tpu.memory_space<vmem>>, vector<16x1xf32>
      %122 = vector.broadcast %121 : vector<16x1xf32> to vector<16x8xf32>
      %123 = arith.mulf %120, %122 : vector<16x8xf32>
      %cst_47 = arith.constant dense<0.000000e+00> : vector<8xf32>
      %124 = vector.multi_reduction <add>, %123, %cst_47 [0] : vector<16x8xf32> to vector<8xf32>
      %125 = vector.shape_cast %124 : vector<8xf32> to vector<1x8xf32>
      %126 = math.exp %125 : vector<1x8xf32>
      %cst_48 = arith.constant 0.000000e+00 : f32
      %c0_49 = arith.constant 0 : index
      %127 = memref.load %arg9[%c0_49] : memref<8xf32, #tpu.memory_space<smem>>
      memref.store %cst_48, %arg9[%c0_49] : memref<8xf32, #tpu.memory_space<smem>>
      %cst_50 = arith.constant 0.000000e+00 : f32
      %c1_51 = arith.constant 1 : index
      %128 = memref.load %arg9[%c1_51] : memref<8xf32, #tpu.memory_space<smem>>
      memref.store %cst_50, %arg9[%c1_51] : memref<8xf32, #tpu.memory_space<smem>>
      %cst_52 = arith.constant 0.000000e+00 : f32
      %c2_53 = arith.constant 2 : index
      %129 = memref.load %arg9[%c2_53] : memref<8xf32, #tpu.memory_space<smem>>
      memref.store %cst_52, %arg9[%c2_53] : memref<8xf32, #tpu.memory_space<smem>>
      %c0_54 = arith.constant 0 : index
      %c0_55 = arith.constant 0 : index
      %130 = vector.load %arg5[%c0_54, %c0_55] : memref<1x8xf32, #tpu.memory_space<vmem>>, vector<1x8xf32>
      %131 = arith.mulf %130, %125 : vector<1x8xf32>
      %132 = vector.shape_cast %131 : vector<1x8xf32> to vector<1x1x8xf32>
      %cst_56 = arith.constant dense<0.000000e+00> : vector<1xf32>
      %133 = vector.multi_reduction <add>, %132, %cst_56 [1, 2] : vector<1x1x8xf32> to vector<1xf32>
      %134 = vector.shape_cast %133 : vector<1xf32> to vector<1x1x1xf32>
      %135 = vector.extract %134[0, 0, 0] : f32 from vector<1x1x1xf32>
      %c3 = arith.constant 3 : index
      %136 = memref.load %arg9[%c3] : memref<8xf32, #tpu.memory_space<smem>>
      memref.store %135, %arg9[%c3] : memref<8xf32, #tpu.memory_space<smem>>
      %137 = vector.shape_cast %126 : vector<1x8xf32> to vector<1x1x8xf32>
      %cst_57 = arith.constant dense<0.000000e+00> : vector<1xf32>
      %138 = vector.multi_reduction <add>, %137, %cst_57 [1, 2] : vector<1x1x8xf32> to vector<1xf32>
      %139 = vector.shape_cast %138 : vector<1xf32> to vector<1x1x1xf32>
      %140 = vector.extract %139[0, 0, 0] : f32 from vector<1x1x1xf32>
      %c4 = arith.constant 4 : index
      %141 = memref.load %arg9[%c4] : memref<8xf32, #tpu.memory_space<smem>>
      memref.store %140, %arg9[%c4] : memref<8xf32, #tpu.memory_space<smem>>
    } else {
    }
    %c128_i32 = arith.constant 128 : i32
    %3 = arith.muli %arg0, %c128_i32 : i32
    %4 = tpu.iota {dimensions = array<i32: 1>} : vector<1x128xi32>
    %5 = vector.broadcast %3 : i32 to vector<1x128xi32>
    %6 = arith.addi %5, %4 : vector<1x128xi32>
    %c256_i32 = arith.constant 256 : i32
    %7 = vector.broadcast %c256_i32 : i32 to vector<1x128xi32>
    %8 = arith.cmpi slt, %6, %7 : vector<1x128xi32>
    %c0 = arith.constant 0 : index
    %c0_1 = arith.constant 0 : index
    %9 = vector.load %arg1[%c0, %c0_1] : memref<32x128xf32, #tpu.memory_space<vmem>>, vector<32x128xf32>
    %c0_2 = arith.constant 0 : index
    %c0_3 = arith.constant 0 : index
    %10 = vector.load %arg6[%c0_2, %c0_3] : memref<32x1xf32, #tpu.memory_space<vmem>>, vector<32x1xf32>
    %11 = vector.broadcast %10 : vector<32x1xf32> to vector<32x128xf32>
    %12 = arith.mulf %9, %11 : vector<32x128xf32>
    %cst = arith.constant dense<0.000000e+00> : vector<128xf32>
    %13 = vector.multi_reduction <add>, %12, %cst [0] : vector<32x128xf32> to vector<128xf32>
    %14 = vector.shape_cast %13 : vector<128xf32> to vector<1x128xf32>
    %15 = math.exp %14 : vector<1x128xf32>
    %c0_4 = arith.constant 0 : index
    %16 = memref.load %arg9[%c0_4] : memref<8xf32, #tpu.memory_space<smem>>
    %c0_5 = arith.constant 0 : index
    %c0_6 = arith.constant 0 : index
    %17 = vector.load %arg2[%c0_5, %c0_6] : memref<1x128xf32, #tpu.memory_space<vmem>>, vector<1x128xf32>
    %18 = arith.mulf %17, %14 : vector<1x128xf32>
    %cst_7 = arith.constant 0.000000e+00 : f32
    %19 = vector.broadcast %cst_7 : f32 to vector<1x128xf32>
    %20 = arith.select %8, %18, %19 : vector<1x128xi1>, vector<1x128xf32>
    %21 = vector.shape_cast %20 : vector<1x128xf32> to vector<1x1x128xf32>
    %cst_8 = arith.constant dense<0.000000e+00> : vector<1xf32>
    %22 = vector.multi_reduction <add>, %21, %cst_8 [1, 2] : vector<1x1x128xf32> to vector<1xf32>
    %23 = vector.shape_cast %22 : vector<1xf32> to vector<1x1x1xf32>
    %24 = vector.extract %23[0, 0, 0] : f32 from vector<1x1x1xf32>
    %25 = arith.addf %16, %24 : f32
    %c0_9 = arith.constant 0 : index
    %26 = memref.load %arg9[%c0_9] : memref<8xf32, #tpu.memory_space<smem>>
    memref.store %25, %arg9[%c0_9] : memref<8xf32, #tpu.memory_space<smem>>
    %c1 = arith.constant 1 : index
    %27 = memref.load %arg9[%c1] : memref<8xf32, #tpu.memory_space<smem>>
    %cst_10 = arith.constant 0.000000e+00 : f32
    %28 = vector.broadcast %cst_10 : f32 to vector<1x128xf32>
    %29 = arith.select %8, %15, %28 : vector<1x128xi1>, vector<1x128xf32>
    %30 = vector.shape_cast %29 : vector<1x128xf32> to vector<1x1x128xf32>
    %cst_11 = arith.constant dense<0.000000e+00> : vector<1xf32>
    %31 = vector.multi_reduction <add>, %30, %cst_11 [1, 2] : vector<1x1x128xf32> to vector<1xf32>
    %32 = vector.shape_cast %31 : vector<1xf32> to vector<1x1x1xf32>
    %33 = vector.extract %32[0, 0, 0] : f32 from vector<1x1x1xf32>
    %34 = arith.addf %27, %33 : f32
    %c1_12 = arith.constant 1 : index
    %35 = memref.load %arg9[%c1_12] : memref<8xf32, #tpu.memory_space<smem>>
    memref.store %34, %arg9[%c1_12] : memref<8xf32, #tpu.memory_space<smem>>
    %c0_13 = arith.constant 0 : index
    %c0_14 = arith.constant 0 : index
    %36 = vector.load %arg3[%c0_13, %c0_14] : memref<8x128xf32, #tpu.memory_space<vmem>>, vector<8x128xf32>
    %cst_15 = arith.constant 0.000000e+00 : f32
    %37 = vector.broadcast %cst_15 : f32 to vector<8x128xf32>
    %38 = arith.cmpf ogt, %36, %37 : vector<8x128xf32>
    %cst_16 = arith.constant 1.000000e+00 : f32
    %39 = vector.broadcast %cst_16 : f32 to vector<8x128xf32>
    %40 = arith.select %38, %36, %39 : vector<8x128xi1>, vector<8x128xf32>
    %41 = math.log %40 : vector<8x128xf32>
    %42 = arith.mulf %36, %41 : vector<8x128xf32>
    %43 = arith.subf %42, %36 : vector<8x128xf32>
    %cst_17 = arith.constant 1.000000e+00 : f32
    %44 = vector.broadcast %cst_17 : f32 to vector<8x128xf32>
    %45 = arith.addf %36, %44 : vector<8x128xf32>
    %cst_18 = arith.constant 1.000000e+00 : f32
    %46 = vector.broadcast %cst_18 : f32 to vector<8x128xf32>
    %47 = arith.subf %45, %46 : vector<8x128xf32>
    %48 = arith.mulf %47, %47 : vector<8x128xf32>
    %cst_19 = arith.constant 1.000000e+00 : f32
    %49 = vector.broadcast %cst_19 : f32 to vector<8x128xf32>
    %cst_20 = arith.constant -582.618835 : f32
    %50 = vector.broadcast %cst_20 : f32 to vector<8x128xf32>
    %51 = arith.mulf %50, %47 : vector<8x128xf32>
    %cst_21 = arith.constant 93.9015197 : f32
    %52 = vector.broadcast %cst_21 : f32 to vector<8x128xf32>
    %53 = arith.addf %51, %52 : vector<8x128xf32>
    %cst_22 = arith.constant 3.000000e+00 : f32
    %54 = vector.broadcast %cst_22 : f32 to vector<8x128xf32>
    %55 = arith.mulf %54, %47 : vector<8x128xf32>
    %56 = arith.addf %48, %55 : vector<8x128xf32>
    %cst_23 = arith.constant 2.000000e+00 : f32
    %57 = vector.broadcast %cst_23 : f32 to vector<8x128xf32>
    %58 = arith.addf %56, %57 : vector<8x128xf32>
    %59 = arith.divf %53, %58 : vector<8x128xf32>
    %60 = arith.addf %49, %59 : vector<8x128xf32>
    %cst_24 = arith.constant 594.708374 : f32
    %61 = vector.broadcast %cst_24 : f32 to vector<8x128xf32>
    %62 = arith.mulf %61, %47 : vector<8x128xf32>
    %cst_25 = arith.constant 2555.44873 : f32
    %63 = vector.broadcast %cst_25 : f32 to vector<8x128xf32>
    %64 = arith.addf %62, %63 : vector<8x128xf32>
    %cst_26 = arith.constant 7.000000e+00 : f32
    %65 = vector.broadcast %cst_26 : f32 to vector<8x128xf32>
    %66 = arith.mulf %65, %47 : vector<8x128xf32>
    %67 = arith.addf %48, %66 : vector<8x128xf32>
    %cst_27 = arith.constant 1.200000e+01 : f32
    %68 = vector.broadcast %cst_27 : f32 to vector<8x128xf32>
    %69 = arith.addf %67, %68 : vector<8x128xf32>
    %70 = arith.divf %64, %69 : vector<8x128xf32>
    %71 = arith.addf %60, %70 : vector<8x128xf32>
    %cst_28 = arith.constant 12.3687725 : f32
    %72 = vector.broadcast %cst_28 : f32 to vector<8x128xf32>
    %73 = arith.mulf %72, %47 : vector<8x128xf32>
    %cst_29 = arith.constant 74.3512039 : f32
    %74 = vector.broadcast %cst_29 : f32 to vector<8x128xf32>
    %75 = arith.addf %73, %74 : vector<8x128xf32>
    %cst_30 = arith.constant 1.100000e+01 : f32
    %76 = vector.broadcast %cst_30 : f32 to vector<8x128xf32>
    %77 = arith.mulf %76, %47 : vector<8x128xf32>
    %78 = arith.addf %48, %77 : vector<8x128xf32>
    %cst_31 = arith.constant 3.000000e+01 : f32
    %79 = vector.broadcast %cst_31 : f32 to vector<8x128xf32>
    %80 = arith.addf %78, %79 : vector<8x128xf32>
    %81 = arith.divf %75, %80 : vector<8x128xf32>
    %82 = arith.addf %71, %81 : vector<8x128xf32>
    %cst_32 = arith.constant 1.01349333E-5 : f32
    %83 = vector.broadcast %cst_32 : f32 to vector<8x128xf32>
    %84 = arith.mulf %83, %47 : vector<8x128xf32>
    %cst_33 = arith.constant 8.09288976E-5 : f32
    %85 = vector.broadcast %cst_33 : f32 to vector<8x128xf32>
    %86 = arith.addf %84, %85 : vector<8x128xf32>
    %cst_34 = arith.constant 1.500000e+01 : f32
    %87 = vector.broadcast %cst_34 : f32 to vector<8x128xf32>
    %88 = arith.mulf %87, %47 : vector<8x128xf32>
    %89 = arith.addf %48, %88 : vector<8x128xf32>
    %cst_35 = arith.constant 5.600000e+01 : f32
    %90 = vector.broadcast %cst_35 : f32 to vector<8x128xf32>
    %91 = arith.addf %89, %90 : vector<8x128xf32>
    %92 = arith.divf %86, %91 : vector<8x128xf32>
    %93 = arith.addf %82, %92 : vector<8x128xf32>
    %cst_36 = arith.constant 7.500000e+00 : f32
    %94 = vector.broadcast %cst_36 : f32 to vector<8x128xf32>
    %95 = arith.addf %47, %94 : vector<8x128xf32>
    %cst_37 = arith.constant 5.000000e-01 : f32
    %96 = vector.broadcast %cst_37 : f32 to vector<8x128xf32>
    %97 = arith.addf %47, %96 : vector<8x128xf32>
    %98 = math.log %95 : vector<8x128xf32>
    %99 = arith.mulf %97, %98 : vector<8x128xf32>
    %cst_38 = arith.constant 0.918938517 : f32
    %100 = vector.broadcast %cst_38 : f32 to vector<8x128xf32>
    %101 = arith.addf %100, %99 : vector<8x128xf32>
    %102 = arith.subf %101, %95 : vector<8x128xf32>
    %103 = math.log %93 : vector<8x128xf32>
    %104 = arith.addf %102, %103 : vector<8x128xf32>
    %105 = arith.addf %43, %104 : vector<8x128xf32>
    %c2 = arith.constant 2 : index
    %106 = memref.load %arg9[%c2] : memref<8xf32, #tpu.memory_space<smem>>
    %107 = vector.broadcast %8 : vector<1x128xi1> to vector<8x128xi1>
    %108 = arith.andi %38, %107 : vector<8x128xi1>
    %cst_39 = arith.constant 0.000000e+00 : f32
    %109 = vector.broadcast %cst_39 : f32 to vector<8x128xf32>
    %110 = arith.select %108, %105, %109 : vector<8x128xi1>, vector<8x128xf32>
    %111 = vector.shape_cast %110 : vector<8x128xf32> to vector<1x8x128xf32>
    %cst_40 = arith.constant dense<0.000000e+00> : vector<1xf32>
    %112 = vector.multi_reduction <add>, %111, %cst_40 [1, 2] : vector<1x8x128xf32> to vector<1xf32>
    %113 = vector.shape_cast %112 : vector<1xf32> to vector<1x1x1xf32>
    %114 = vector.extract %113[0, 0, 0] : f32 from vector<1x1x1xf32>
    %115 = arith.addf %106, %114 : f32
    %c2_41 = arith.constant 2 : index
    %116 = memref.load %arg9[%c2_41] : memref<8xf32, #tpu.memory_space<smem>>
    memref.store %115, %arg9[%c2_41] : memref<8xf32, #tpu.memory_space<smem>>
    %c1_i32 = arith.constant 1 : i32
    %117 = arith.cmpi eq, %arg0, %c1_i32 : i32
    %118 = arith.extui %117 : i1 to i32
    %c0_i32_42 = arith.constant 0 : i32
    %119 = arith.cmpi ne, %118, %c0_i32_42 : i32
    scf.if %119 {
      %c0_43 = arith.constant 0 : index
      %120 = memref.load %arg9[%c0_43] : memref<8xf32, #tpu.memory_space<smem>>
      %c3 = arith.constant 3 : index
      %121 = memref.load %arg9[%c3] : memref<8xf32, #tpu.memory_space<smem>>
      %122 = arith.addf %120, %121 : f32
      %c1_44 = arith.constant 1 : index
      %123 = memref.load %arg9[%c1_44] : memref<8xf32, #tpu.memory_space<smem>>
      %c4 = arith.constant 4 : index
      %124 = memref.load %arg9[%c4] : memref<8xf32, #tpu.memory_space<smem>>
      %125 = arith.mulf %123, %124 : f32
      %126 = arith.subf %122, %125 : f32
      %c0_45 = arith.constant 0 : index
      %c0_46 = arith.constant 0 : index
      %127 = memref.load %arg8[%c0_45, %c0_46] : memref<1x2xf32, #tpu.memory_space<smem>>
      memref.store %126, %arg8[%c0_45, %c0_46] : memref<1x2xf32, #tpu.memory_space<smem>>
      %c2_47 = arith.constant 2 : index
      %128 = memref.load %arg9[%c2_47] : memref<8xf32, #tpu.memory_space<smem>>
      %c0_48 = arith.constant 0 : index
      %c1_49 = arith.constant 1 : index
      %129 = memref.load %arg8[%c0_48, %c1_49] : memref<1x2xf32, #tpu.memory_space<smem>>
      memref.store %128, %arg8[%c0_48, %c1_49] : memref<1x2xf32, #tpu.memory_space<smem>>
    } else {
    }
    return
  }
  func.func @transform_0(%arg0: i32) -> (i32, i32) {
    %c0_i32 = arith.constant 0 : i32
    %c0_i32_0 = arith.constant 0 : i32
    return %c0_i32, %arg0 : i32, i32
  }
  func.func @transform_1(%arg0: i32) -> (i32, i32) {
    %c0_i32 = arith.constant 0 : i32
    %c0_i32_0 = arith.constant 0 : i32
    return %c0_i32, %arg0 : i32, i32
  }
  func.func @transform_2(%arg0: i32) -> (i32, i32) {
    %c0_i32 = arith.constant 0 : i32
    %c0_i32_0 = arith.constant 0 : i32
    return %c0_i32, %arg0 : i32, i32
  }
  func.func @transform_3(%arg0: i32) -> (i32, i32) {
    %c0_i32 = arith.constant 0 : i32
    %c0_i32_0 = arith.constant 0 : i32
    %c0_i32_1 = arith.constant 0 : i32
    return %c0_i32, %c0_i32_0 : i32, i32
  }
  func.func @transform_4(%arg0: i32) -> (i32, i32) {
    %c0_i32 = arith.constant 0 : i32
    %c0_i32_0 = arith.constant 0 : i32
    %c0_i32_1 = arith.constant 0 : i32
    return %c0_i32, %c0_i32_0 : i32, i32
  }
  func.func @transform_5(%arg0: i32) -> (i32, i32) {
    %c0_i32 = arith.constant 0 : i32
    %c0_i32_0 = arith.constant 0 : i32
    %c0_i32_1 = arith.constant 0 : i32
    return %c0_i32, %c0_i32_0 : i32, i32
  }
  func.func @transform_6(%arg0: i32) -> (i32, i32) {
    %c0_i32 = arith.constant 0 : i32
    %c0_i32_0 = arith.constant 0 : i32
    %c0_i32_1 = arith.constant 0 : i32
    return %c0_i32, %c0_i32_0 : i32, i32
  }
  func.func @transform_7(%arg0: i32) -> (i32, i32) {
    %c0_i32 = arith.constant 0 : i32
    %c0_i32_0 = arith.constant 0 : i32
    %c0_i32_1 = arith.constant 0 : i32
    return %c0_i32, %c0_i32_0 : i32, i32
  }
}

</mosaic_0001>

<bundles_post_ra>
// kernel: tpu_custom_call.1
= control target key start
LH: loop header
LB: loop body
LE: loop exit
PB: predicated region body
PF: predicated region fallthrough
CT: control target
= control target key end

     0   :  { %12 = vsyncpa [#allocation5], 0  ;;  %s1063_s0 = inlined_call_operand.vmem [shape: f32[32,256], index: 0, kind: input, shape index: {}]   ;;  %s1064_s1 = inlined_call_operand.vmem [shape: f32[1,256], index: 1, kind: input, shape index: {}]   ;;  %s1065_s2 = inlined_call_operand.hbm [shape: f32[8,256], index: 2, kind: input, shape index: {}]   ;;  %s1066_s3 = inlined_call_operand.vmem [shape: f32[16,8], index: 3, kind: input, shape index: {}]   ;;  %s1067_s4 = inlined_call_operand.vmem [shape: f32[1,8], index: 4, kind: input, shape index: {}]   ;;  %s1068_s5 = inlined_call_operand.vmem [shape: f32[32,1], index: 5, kind: input, shape index: {}]   ;;  %s1069_s6 = inlined_call_operand.vmem [shape: f32[16,1], index: 6, kind: input, shape index: {}]   ;;  %s1070_s7 = inlined_call_operand.hbm [shape: f32[1,2], index: 7, kind: output, shape index: {}]  }
   0x1   :  { %14 = vsyncpa [#allocation5 + $0x1], 0 }
   0x2   :  { %15 = vsyncpa [#allocation6], 0  ;;  %s903_s24 = smov 0   ;;  %s905_s25 = smov 0  }
   0x3   :  { %s907_s26 = smov 0   ;;  %s909_s27 = smov 0  }
   0x4 LB: > { %s922_s28 = sadd.s32 4294967295, %s856_s27   ;;  %s925_s29 = sadd.s32 1, %s856_s27   ;;  %s856_s27 = sphi %s909_s27, %s1076_s27   ;;  %s852_s26 = sphi %s907_s26, %s1075_s26   ;;  %s848_s25 = sphi %s905_s25, %s1074_s25   ;;  %s844_s24 = sphi %s903_s24, %s1073_s24  }
   0x5   : > { %s25_s30 = ssub.s32 %s856_s27, %s925_s29  ;;  %s28_s8 = sadd.s32 1, %s852_s26 }
   0x6   : > { %p26_p0 = scmp.eq.s32.totalorder %s25_s30, 0  ;;  %p35_p1 = scmp.ne.s32.totalorder %s852_s26, %s848_s25 }
   0x7   : > { %p36_p2 = scmp.eq.s32.totalorder %s856_s27, 0  ;;  %p93_p3 = scmp.ne.s32.totalorder %s848_s25, %s844_s24 }
   0x8   : > { %s935_s9 = scalar_select %p26_p0, %s852_s26, %s28_s8  }
   0x9   : > { %p937_p4 = por %p36_p2, %p35_p1  ;;  %p94_p5 = scmp.eq.s32.totalorder %s922_s28, 0 }
   0xa   : > { %p681_p7 = scmp.ge.s32.totalorder %s856_s27, 2 }
   0xb   : > { %p942_p6 = por %p94_p5, %p93_p3 }
   0xc   : > { %230 = sbr.rel (%p681_p7) target bundleno = 47 (0x2f), region = 32 }
  0x11   : > { %233 = sbr.rel (!%p937_p4) target bundleno = 23 (0x17), region = 36  ;;  %s235_s12 = sand.u32 (%p937_p4), 1, %s852_s26  }
  0x12   : > { %s683_s13 = sshll.u32 (%p937_p4), %s856_s27, 3  ;;  %s682_s14 = sshll.u32 (%p937_p4), %s235_s12, 5 }
  0x13   : > { %s239_s17 = scalar_lea.vmem (%p937_p4), %s1063_s0, %s683_s13  ;;  %s237_s18 = scalar_lea.vmem (%p937_p4), [#allocation3], %s682_s14 }
  0x14   : > { %v274_v0 = vld [vmem:[%s239_s17] sm:$0xff] (%p937_p4)  ;;  %v276_v1 = vld [vmem:[%s239_s17 + $0x10] sm:$0xff] (%p937_p4) }
  0x15   : > { %v278_v2 = vld [vmem:[%s239_s17 + $0x20] sm:$0xff] (%p937_p4)  ;;  %275 = vst [vmem:[%s237_s18] sm:$0xff] (%p937_p4), %v274_v0  ;;  %277 = vst [vmem:[%s237_s18 + $0x8] sm:$0xff] (%p937_p4), %v276_v1  ;;  %v280_v3 = vld [vmem:[%s239_s17 + $0x30] sm:$0xff] (%p937_p4) }
  0x16   : > { %279 = vst [vmem:[%s237_s18 + $0x10] sm:$0xff] %v278_v2  ;;  %281 = vst [vmem:[%s237_s18 + $0x18] sm:$0xff] %v280_v3 }
  0x17 PF: > { %s294_s19 = sand.u32 1, %s852_s26   ;;  %s685_s20 = sshll.u32 %s856_s27, 7 }
  0x18   : > { %s684_s21 = sshll.u32 %s294_s19, 3  ;;  %s959_s24 = scalar_lea.hbm %s1065_s2, %s685_s20 }
  0x19   : > { %s298_s30 = scalar_lea.vmem [#allocation4], %s684_s21  ;;  %s295_s12 = scalar_lea.sflag [#allocation5], %s294_s19 }
  0x1a   : > { %s305_s8 = sshll.u32 %s298_s30, 4  ;;  %s782_s13 = scalar_lea.hbm %s959_s24, 128  ;;  %s306_s8 = int_to_ptr.vmem [resolvable:$true] %s305_s8 }
  0x1b   : > { %p783_p8 = scmp.ne.s32.totalorder %s959_s24, %s782_s13  ;;  %s786_s16 = scalar_lea.hbm %s1065_s2, 256 }
  0x1c   : > { %p787_p11 = scmp.lt.s32.totalorder %s959_s24, %s1065_s2  ;;  %p788_p12 = scmp.lt.s32.totalorder %s786_s16, %s782_s13 }
  0x1d   : > { %p784_p9 = pnand %p783_p8, %p937_p4 }
  0x1e   : > { %p789_p13 = por %p788_p12, %p787_p11 }
  0x1f   : > { %p785_p10 = pneg %p784_p9 }
  0x21   : > { %p790_p0 = pnand %p789_p13, %p785_p10 }
  0x23   : > { %793 = shalt.err (!%p790_p0)
}
  0x24   : > { %s794_s20 = scalar_lea.vmem %s306_s8, 128  ;;  %s858_s19 = smov [#allocation4]  }
  0x25   : > { %p795_p1 = scmp.ne.s32.totalorder %s306_s8, %s794_s20  ;;  %s798_s21 = sshll.u32 %s858_s19, 4  ;;  %s799_s21 = int_to_ptr.vmem [resolvable:$false] %s798_s21 }
  0x26   : > { %s800_s22 = scalar_lea.vmem %s799_s21, 256  ;;  %p801_p5 = scmp.lt.s32.totalorder %s306_s8, %s799_s21 }
  0x27   : > { %p796_p2 = pnand %p795_p1, %p937_p4  ;;  %p802_p7 = scmp.lt.s32.totalorder %s800_s22, %s794_s20 }
  0x29   : > { %p797_p3 = pneg %p796_p2  ;;  %p803_p8 = por %p802_p7, %p801_p5 }
  0x2b   : > { %p804_p9 = pnand %p803_p8, %p797_p3 }
  0x2d   : > { %807 = shalt.err (!%p804_p9)
}
  0x2e   : > { %713 = dma.hbm_to_vmem [thread:$0]  (%p937_p4), %s959_s24, 128, %s306_s8, %s295_s12  }
  0x2f PF: > { %p686_p10 = scmp.ge.s32.totalorder %s856_s27, 1  ;;  %p310_p11 = scmp.lt.s32.totalorder %s856_s27, 3 }
  0x31   : > { %p311_p12 = pnand %p686_p10, %p310_p11 }
  0x32   : > { %s317_s23 = sand.u32 (!%p311_p12), 1, %s848_s25  }
  0x33   : > { %314 = sbr.rel (%p311_p12) target bundleno = 809 (0x329), region = 82  ;;  %s687_s30 = sshll.u32 (!%p311_p12), %s317_s23, 5 }
  0x34   : > { %s688_s13 = sshll.u32 (!%p311_p12), %s317_s23, 3  ;;  %s980_s14 = scalar_lea.vmem (!%p311_p12), [#allocation3], %s687_s30 }
  0x35   : > { %s324_s15 = scalar_lea.sflag (!%p311_p12), [#allocation5], %s317_s23  ;;  %s982_s16 = scalar_lea.vmem (!%p311_p12), [#allocation4], %s688_s13 }
  0x38   : > { %835 = dma.done.wait (%p942_p6), %s324_s15, 128  }
  0x39   : > { %837 = vsyncadd (%p942_p6), %s324_s15, 4294967168  ;;  %p360_p4 = scmp.lt.s32.totalorder %s922_s28, 1  ;;  %p689_p13 = scmp.ne.s32.totalorder %s922_s28, 0 }
  0x3a   : > { %s860_s13 = smov (!%p689_p13), 0.0  }
  0x3b   : > { %s990_s27 = scalar_select %p360_p4, %s922_s28, 1 }
  0x3c   : > { %366 = sbr.rel (%p689_p13) target bundleno = 430 (0x1ae), region = 94  ;;  %396 = sst [smem:[#allocation2]] (!%p689_p13), %s860_s13 }
  0x3d   : > { %s362_s8 = scalar_lea.vmem %s1064_s1, %s990_s27  ;;  %398 = sst [smem:[#allocation2 + $0x1]] (!%p689_p13), %s860_s13 }
  0x3e   : > { %400 = sst [smem:[#allocation2 + $0x2]] (!%p689_p13), %s860_s13 }
  0x41   : > { %v369_v4 = vld [vmem:[%s1069_s6] sm:$0xff]  ;;  %v859_v5 = vmov 0   ;;  %v370_v6 = vld [vmem:[%s1069_s6 + $0x8] sm:$0xff]  ;;  %vm383_vm0 = vcmask 64512   ;;  %vm403_vm1 = vcmask 57344  }
  0x42   : > { %761 = vset.pattern.permute.xlu0 %v859_v5  ;;  %v367_v8 = vld [vmem:[%s1066_s3] sm:$0xff]  ;;  %v368_v9 = vld [vmem:[%s1066_s3 + $0x8] sm:$0xff] }
  0x43   : > { %373 = vperm.xlu0 %761, %v369_v4   ;;  %v401_v21 = vld [vmem:[%s1067_s4] sm:$0x1] }
  0x47   : > { %378 = vperm.xlu0 %761, %v370_v6  }
  0xbe   : > { %v374_v7 = vpop.permute.xlu0 %373 }
  0xbf   : > { %v381_v10 = vmul.f32 %v374_v7, %v367_v8 }
  0xc1   : > { %v384_v13 = vsel %vm383_vm0, %v381_v10, 0.0 }
  0xc2   : > { %v379_v11 = vpop.permute.xlu0 %378 }
  0xc3   : > { %v382_v12 = vmul.f32 %v379_v11, %v368_v9 }
  0xc5   : > { %v385_v14 = vsel %vm383_vm0, %v382_v12, 0.0 }
  0xc6   : > { %v386_v15 = vadd.f32 %v385_v14, %v384_v13 }
  0xc8   : > { %v387_v16 = vrot.slane %v386_v15, 4 }
  0xca   : > { %v388_v17 = vadd.f32 %v387_v16, %v386_v15 }
  0xcc   : > { %v389_v18 = vrot.slane %v388_v17, 2 }
  0xce   : > { %v390_v19 = vadd.f32 %v389_v18, %v388_v17 }
  0xd0   : > { %v391_v20 = vrot.slane %v390_v19, 1 }
  0xd2   : > { %v392_v22 = vadd.f32 %v391_v20, %v390_v19 }
  0xd4   : > { %v402_v23 = vmul.f32 %v401_v21, %v392_v22  ;;  %v393_v24 = vmul.f32 1.442695, %v392_v22 }
  0xd6   : > { %v404_v25 = vsel %vm403_vm1, %v402_v23, 0.0  ;;  %762 = vpow2.f32 %v393_v24 }
  0xd7   : > { %405 = vadd.xlane.f32.xlu1 %v404_v25 }
  0xe3   : > { %v763_v26 = vpop.eup %762 }
  0xe4   : > { %v416_v27 = vsel %vm403_vm1, %v763_v26, 0.0 }
  0xe5   : > { %417 = vadd.xlane.f32.xlu1 %v416_v27 }
 0x160   : > { %v406_v28 = vpop.xlane.xlu1 %405 }
 0x161   : > { %v407_v29 = vrot.slane %v406_v28, 4 }
 0x163   : > { %v408_v30 = vadd.f32 %v407_v29, %v406_v28 }
 0x165   : > { %v409_v31 = vrot.slane %v408_v30, 2 }
 0x167   : > { %v410_v32 = vadd.f32 %v409_v31, %v408_v30 }
 0x169   : > { %v411_v33 = vrot.slane %v410_v32, 1 }
 0x16b   : > { %v412_v34 = vadd.f32 %v411_v33, %v410_v32 }
 0x16d   : > { %703 = vpush %v412_v34 }
 0x16e   : > { %v418_v35 = vpop.xlane.xlu1 %417 }
 0x16f   : > { %v419_v36 = vrot.slane %v418_v35, 4 }
 0x171   : > { %v420_v37 = vadd.f32 %v419_v36, %v418_v35 }
 0x173   : > { %v421_v38 = vrot.slane %v420_v37, 2 }
 0x175   : > { %v422_v39 = vadd.f32 %v421_v38, %v420_v37 }
 0x177   : > { %v423_v40 = vrot.slane %v422_v39, 1 }
 0x179   : > { %v424_v41 = vadd.f32 %v423_v40, %v422_v39 }
 0x17b   : > { %705 = vpush %v424_v41 }
 0x19e   : > { %s704_s15 = spop %703 }
 0x19f   : > { %415 = sst [smem:[#allocation2 + $0x3]] %s704_s15 }
 0x1ac   : > { %s706_s10 = spop %705 }
 0x1ad   : > { %427 = sst [smem:[#allocation2 + $0x4]] %s706_s10 }
 0x1ae PF: > { %v440_v42 = vld [vmem:[%s1068_s5 + $0x10] sm:$0xff]  ;;  %v438_v43 = vld [vmem:[%s1068_s5] sm:$0xff]  ;;  %v861_v44 = vmov 0   ;;  %v441_v45 = vld [vmem:[%s1068_s5 + $0x18] sm:$0xff]  ;;  %v429_v41 = vlaneseq  ;;  %vm481_vm4 = vcmask 1040384   ;;  %s477_s27 = sld [smem:[#allocation2]] }
 0x1af   : > { %765 = vset.pattern.permute.xlu1 %v861_v44  ;;  %764 = vset.pattern.permute.xlu0 %v861_v44  ;;  %v439_v46 = vld [vmem:[%s1068_s5 + $0x8] sm:$0xff]  ;;  %v434_v23 = vld [vmem:[%s980_s14] sm:$0xff]  ;;  %v436_v26 = vld [vmem:[%s980_s14 + $0x10] sm:$0xff]  ;;  %s695_s30 = sld [smem:[#allocation2 + $0x3]]  ;;  %p722_p6 = scmp.eq.s32.totalorder %s922_s28, 1 }
 0x1b0   : > { %454 = vperm.xlu1 %765, %v440_v42   ;;  %444 = vperm.xlu0 %764, %v438_v43   ;;  %v1025_v47 = vld [vmem:[%s982_s16] sm:$0xff]  ;;  %v437_v31 = vld [vmem:[%s980_s14 + $0x18] sm:$0xff]  ;;  %s690_s16 = sshll.u32 %s922_s28, 7  ;;  %s691_s13 = sld [smem:[#allocation2 + $0x1]] }
 0x1b1   : > { %v517_v48 = vadd.f32 1.0, %v1025_v47  ;;  %vm511_vm2 = vcmp.gt.f32.partialorder %v1025_v47, 0.0  ;;  %v435_v24 = vld [vmem:[%s980_s14 + $0x8] sm:$0xff]  ;;  %s693_s15 = sld [smem:[#allocation2 + $0x2]]  ;;  %s862_s21 = smov [#allocation7]  }
 0x1b2   : > { %v512_v19 = vsel %vm511_vm2, %v1025_v47, 1.0  ;;  %s697_s10 = sld [smem:[#allocation2 + $0x4]] }
 0x1b3   : > { %v692_v49 = vadd.f32 -1.0, %v517_v48  ;;  %v430_v48 = vand.u32 127, %v429_v41 }
 0x1b4   : > { %459 = vperm.xlu1 %765, %v441_v45   ;;  %449 = vperm.xlu0 %764, %v439_v46  }
 0x1b5   : > { %v519_v50 = vmul.f32 %v692_v49, %v692_v49  ;;  %v522_v51 = vmul.f32 3.0, %v692_v49  ;;  %v530_v53 = vmul.f32 7.0, %v692_v49  ;;  %v538_v56 = vmul.f32 11.0, %v692_v49 }
 0x1b6   : > { %v546_v59 = vmul.f32 15.0, %v692_v49  ;;  %v520_v62 = vmul.f32 -582.61884, %v692_v49  ;;  %v528_v1 = vmul.f32 594.7084, %v692_v49  ;;  %v552_v11 = vadd.f32 7.5, %v692_v49 }
 0x1b7   : > { %v523_v52 = vadd.f32 %v522_v51, %v519_v50  ;;  %v531_v55 = vadd.f32 %v530_v53, %v519_v50  ;;  %v539_v58 = vadd.f32 %v538_v56, %v519_v50  ;;  %v536_v5 = vmul.f32 12.3687725, %v692_v49 }
 0x1b8   : > { %v547_v61 = vadd.f32 %v546_v59, %v519_v50  ;;  %v521_v0 = vadd.f32 93.90152, %v520_v62  ;;  %v529_v4 = vadd.f32 2555.4487, %v528_v1  ;;  %v544_v7 = vmul.f32 1.0134933e-05, %v692_v49 }
 0x1b9   : > { %v524_v54 = vadd.f32 2.0, %v523_v52  ;;  %v532_v57 = vadd.f32 12.0, %v531_v55  ;;  %v540_v60 = vadd.f32 30.0, %v539_v58  ;;  %v537_v10 = vadd.f32 74.351204, %v536_v5 }
 0x1ba   : > { %v548_v63 = vadd.f32 56.0, %v547_v61  ;;  %v545_v15 = vadd.f32 8.09289e-05, %v544_v7  ;;  %v553_v32 = vadd.f32 0.5, %v692_v49  ;;  %v431_v50 = vstv %s690_s16 }
 0x1bb   : > { %766 = vrcp.f32 %v524_v54  ;;  %v432_v55 = vadd.s32 %v431_v50, %v430_v48 }
 0x1bc   : > { %768 = vrcp.f32 %v532_v57  ;;  %v478_v57 = vld [vmem:[%s362_s8] sm:$0x1] }
 0x1bd   : > { %770 = vrcp.f32 %v540_v60  ;;  %vm433_vm3 = vcmp.lt.s32.totalorder %v432_v55, 256 }
 0x1be   : > { %772 = vrcp.f32 %v548_v63  ;;  %vm566_vm5 = vmand %vm511_vm2, %vm433_vm3 }
 0x1bf   : > { %774 = vlog2.f32 %v552_v11 }
 0x1c0   : > { %776 = vlog2.f32 %v512_v19 }
 0x1c8   : > { %v767_v2 = vpop.eup %766 }
 0x1c9   : > { %v526_v3 = vmul.f32 %v767_v2, %v521_v0  ;;  %v769_v6 = vpop.eup %768 }
 0x1ca   : > { %v534_v9 = vmul.f32 %v769_v6, %v529_v4  ;;  %v771_v12 = vpop.eup %770 }
 0x1cb   : > { %v527_v8 = vadd.f32 1.0, %v526_v3  ;;  %v542_v14 = vmul.f32 %v771_v12, %v537_v10  ;;  %v773_v16 = vpop.eup %772 }
 0x1cc   : > { %v550_v18 = vmul.f32 %v773_v16, %v545_v15  ;;  %v775_v25 = vpop.eup %774 }
 0x1cd   : > { %v535_v13 = vadd.f32 %v534_v9, %v527_v8  ;;  %v555_v33 = vmul.f32 0.6931472, %v775_v25  ;;  %v777_v39 = vpop.eup %776 }
 0x1ce   : > { %v514_v43 = vmul.f32 0.6931472, %v777_v39 }
 0x1cf   : > { %v543_v17 = vadd.f32 %v542_v14, %v535_v13  ;;  %v556_v38 = vmul.f32 %v555_v33, %v553_v32 }
 0x1d0   : > { %v515_v49 = vmul.f32 %v514_v43, %v1025_v47 }
 0x1d1   : > { %v551_v20 = vadd.f32 %v550_v18, %v543_v17  ;;  %v557_v44 = vadd.f32 0.9189385, %v556_v38 }
 0x1d2   : > { %v516_v58 = vsub.f32 %v515_v49, %v1025_v47 }
 0x1d3   : > { %778 = vlog2.f32 %v551_v20  ;;  %v558_v52 = vsub.f32 %v557_v44, %v552_v11 }
 0x1e0   : > { %v779_v45 = vpop.eup %778 }
 0x1e1   : > { %v560_v53 = vmul.f32 0.6931472, %v779_v45 }
 0x1e3   : > { %v561_v59 = vadd.f32 %v560_v53, %v558_v52 }
 0x1e5   : > { %v562_v63 = vadd.f32 %v561_v59, %v516_v58 }
 0x1e7   : > { %v567_v2 = vsel %vm566_vm5, %v562_v63, 0.0 }
 0x22b   : > { %v455_v21 = vpop.permute.xlu1 %454  ;;  %v445_v22 = vpop.permute.xlu0 %444 }
 0x22c   : > { %v462_v28 = vmul.f32 %v445_v22, %v434_v23  ;;  %v464_v34 = vmul.f32 %v455_v21, %v436_v26 }
 0x22f   : > { %v450_v27 = vpop.permute.xlu0 %449  ;;  %v460_v30 = vpop.permute.xlu1 %459 }
 0x230   : > { %v463_v29 = vmul.f32 %v450_v27, %v435_v24  ;;  %v465_v36 = vmul.f32 %v460_v30, %v437_v31 }
 0x232   : > { %v466_v35 = vadd.f32 %v463_v29, %v462_v28 }
 0x234   : > { %v467_v37 = vadd.f32 %v466_v35, %v464_v34 }
 0x236   : > { %v468_v40 = vadd.f32 %v467_v37, %v465_v36 }
 0x238   : > { %v469_v42 = vrot.slane %v468_v40, 4 }
 0x23a   : > { %v470_v46 = vadd.f32 %v469_v42, %v468_v40 }
 0x23c   : > { %v471_v51 = vrot.slane %v470_v46, 2 }
 0x23e   : > { %v472_v54 = vadd.f32 %v471_v51, %v470_v46 }
 0x240   : > { %v473_v56 = vrot.slane %v472_v54, 1 }
 0x242   : > { %v474_v60 = vadd.f32 %v473_v56, %v472_v54 }
 0x244   : > { %v475_v61 = vmul.f32 1.442695, %v474_v60  ;;  %v479_v62 = vmul.f32 %v478_v57, %v474_v60 }
 0x246   : > { %780 = vpow2.f32 %v475_v61  ;;  %v480_v0 = vsel %vm433_vm3, %v479_v62, 0.0 }
 0x247   : > { %v482_v1 = vsel %vm481_vm4, %v480_v0, 0.0 }
 0x248   : > { %483 = vadd.xlane.f32.xlu0 %v482_v1 }
 0x24c   : > { %568 = vadd.xlane.f32.xlu0 %v567_v2 }
 0x253   : > { %v781_v3 = vpop.eup %780 }
 0x254   : > { %v496_v4 = vsel %vm433_vm3, %v781_v3, 0.0 }
 0x255   : > { %v497_v5 = vsel %vm481_vm4, %v496_v4, 0.0 }
 0x256   : > { %498 = vadd.xlane.f32.xlu1 %v497_v5 }
 0x2d1   : > { %v484_v6 = vpop.xlane.xlu0 %483 }
 0x2d2   : > { %v485_v7 = vrot.slane %v484_v6, 4 }
 0x2d4   : > { %v486_v8 = vadd.f32 %v485_v7, %v484_v6 }
 0x2d5   : > { %v569_v9 = vpop.xlane.xlu0 %568 }
 0x2d6   : > { %v487_v10 = vrot.slane %v486_v8, 2  ;;  %v570_v11 = vrot.slane %v569_v9, 4 }
 0x2d8   : > { %v488_v12 = vadd.f32 %v487_v10, %v486_v8  ;;  %v571_v14 = vadd.f32 %v570_v11, %v569_v9 }
 0x2da   : > { %v489_v13 = vrot.slane %v488_v12, 1  ;;  %v572_v47 = vrot.slane %v571_v14, 2 }
 0x2dc   : > { %v490_v15 = vadd.f32 %v489_v13, %v488_v12  ;;  %v573_v19 = vadd.f32 %v572_v47, %v571_v14 }
 0x2de   : > { %707 = vpush %v490_v15  ;;  %v574_v22 = vrot.slane %v573_v19, 1 }
 0x2df   : > { %v499_v16 = vpop.xlane.xlu1 %498 }
 0x2e0   : > { %v500_v17 = vrot.slane %v499_v16, 4  ;;  %v575_v25 = vadd.f32 %v574_v22, %v573_v19 }
 0x2e2   : > { %v501_v18 = vadd.f32 %v500_v17, %v499_v16 }
 0x2e4   : > { %v502_v20 = vrot.slane %v501_v18, 2 }
 0x2e6   : > { %v503_v21 = vadd.f32 %v502_v20, %v501_v18 }
 0x2e8   : > { %v504_v23 = vrot.slane %v503_v21, 1 }
 0x2ea   : > { %v505_v24 = vadd.f32 %v504_v23, %v503_v21 }
 0x2ec   : > { %709 = vpush %v505_v24 }
 0x2ed   : > { %711 = vpush %v575_v25 }
 0x30f   : > { %s708_s8 = spop %707 }
 0x310   : > { %s492_s23 = sadd.f32 %s708_s8, %s477_s27 }
 0x312   : > { %494 = sst [smem:[#allocation2]] %s492_s23 }
 0x313   : > { %s586_s12 = sadd.f32 %s695_s30, %s492_s23 }
 0x31d   : > { %s710_s24 = spop %709 }
 0x31e   : > { %s507_s17 = sadd.f32 %s710_s24, %s691_s13  ;;  %s712_s11 = spop %711 }
 0x31f   : > { %s577_s18 = sadd.f32 %s712_s11, %s693_s15 }
 0x320   : > { %509 = sst [smem:[#allocation2 + $0x1]] %s507_s17  ;;  %s589_s20 = smul.f32 %s697_s10, %s507_s17 }
 0x321   : > { %579 = sst [smem:[#allocation2 + $0x2]] %s577_s18 }
 0x322   : > { %s590_s19 = ssub.f32 %s586_s12, %s589_s20 }
 0x323   : > { %717 = sst [smem:[#allocation7 + $0x1]] (%p722_p6), %s577_s18 }
 0x324   : > { %716 = sst [smem:[#allocation7]] (%p722_p6), %s590_s19 }
 0x325   : > { %719 = dma.smem_to_hbm (%p722_p6), %s862_s21, 16, %s1070_s7, [#allocation6]  }
 0x326   : > { %839 = dma.done.wait (%p722_p6), [#allocation6], 16  }
 0x327   : > { %841 = vsyncadd (%p722_p6), [#allocation6], 4294967280 }
 0x328   : > { %609 = sfence }
 0x329 PF: > { %p18_p0 = scmp.ge.s32.totalorder %s925_s29, 4   ;;  %s1073_s24 = smov %s848_s25 }
 0x32a   : > { %s1074_s25 = smov %s852_s26  ;;  %s1075_s26 = smov %s935_s9 }
 0x32b   : > { %s1076_s27 = smov %s925_s29  ;;  %20 = sbr.rel (!%p18_p0) target bundleno = 4 (0x4), region = 152 }
 0x330   :  { %615 = vsyncpa [#allocation5], 1 }
 0x331   :  { %617 = vsyncpa [#allocation5 + $0x1], 1 }
 0x332   :  { %618 = vsyncpa [#allocation6], 1 }
 0x333   :  { %620 = vsyncpa [#allocation6 + $0x1], 1 }

</bundles_post_ra>
